<compile_context>
chip_gen: v7x
topology: tpu7x:2x2x1
jax: 0.10.0
libtpu: 0.0.40
codegen_flags: <defaults>
</compile_context>

<pallas_src>
import jax
import jax.numpy as jnp
from jax.experimental import pallas as pl
from jax.experimental.pallas import tpu as pltpu

# Concrete model configuration
CIN = 4
COUT = 8
CODE_LEN = 16
KH = KW = 3

# Kernel-facing (lane-dense) widths
COUT_PAD = 128                 # padded feature width (lanes)
CODE_PAD = 128                 # padded hash-code width (lanes)
K_TAPS = KH * KW * CIN         # 36 im2col taps
K_PAD = 40                     # 36 taps + 1 bias column, padded to a multiple of 8


def _round_up(x, m):
    return (x + m - 1) // m * m


def _choose_batch_blocks(B):
    # Fold up to 8 images per grid step (amortize ~0.35us/step overhead and fill MXU
    # sublanes) but keep >= 2 steps when B >= 2 so v7x's 2 TensorCores stay busy.
    if B <= 1:
        return 1, 1
    bblk = min(8, -(-B // 2))
    nblk = -(-B // bblk)
    return nblk, bblk


# ---------------------------------------------------------------------------
# Fused kernel (one grid step = one batch block of Bblk images):
#   conv3x3(+bias) as one MXU matmul -> ReLU -> mean pool (MXU) -> linear -> tanh
# ---------------------------------------------------------------------------
def fused_cnn_hash_kernel(p_ref, wc_ref, pool_ref, wf_ref, bf_ref, o_ref):
    """
    p_ref    : (1, Bblk*R_pad, K_PAD)   bf16  im2col patches (+ constant-1 bias col)
    wc_ref   : (K_PAD, COUT_PAD)        bf16  conv weights with bias row folded in
    pool_ref : (Bblk_pad, Bblk*R_pad)   f32   block-structured mean-pool matrix
    wf_ref   : (COUT_PAD, CODE_PAD)     f32   hash-head weights (zero-padded)
    bf_ref   : (1, CODE_PAD)            f32   hash-head bias (zero-padded)
    o_ref    : (1, Bblk_pad, CODE_PAD)  f32   one row of codes per image
    """
    patches = p_ref[0]                                          # (Bblk*R_pad, K_PAD) bf16

    # Convolution + bias as one MXU matmul (bf16 operands, f32 accumulation).
    conv = jnp.dot(patches, wc_ref[...],
                   preferred_element_type=jnp.float32)           # (Bblk*R_pad, 128)

    # ReLU on the VPU in f32 (bias already folded into the matmul).
    feat = jnp.maximum(conv, 0.0)

    # Global mean pool as an MXU contraction against the block-diagonal pool matrix.
    pooled = jnp.dot(pool_ref[...], feat,
                     preferred_element_type=jnp.float32)         # (Bblk_pad, 128)

    # Hash head: linear + tanh (tiny, kept in f32).
    logits = jnp.dot(pooled, wf_ref[...],
                     preferred_element_type=jnp.float32) + bf_ref[...]
    o_ref[0] = jnp.tanh(logits)


# ---------------------------------------------------------------------------
# Wrapper: layout plumbing only (pad / transpose / im2col of tiny tensors).
# ---------------------------------------------------------------------------
def model_wrapper0_forward(x_nchw, params):
    w_conv, b_conv, w_fc, b_fc = params
    B, Cin, H, W = x_nchw.shape
    assert Cin == CIN

    nblk, bblk = _choose_batch_blocks(B)
    bblk_pad = _round_up(bblk, 8)
    B_pad = nblk * bblk
    R = H * W
    R_pad = _round_up(R, 8)
    M = bblk * R_pad

    # NCHW -> NHWC, pad batch to whole blocks, zero-pad spatial for 'same' conv.
    x = jnp.transpose(x_nchw, (0, 2, 3, 1)).astype(jnp.float32)
    if B_pad > B:
        x = jnp.pad(x, ((0, B_pad - B), (0, 0), (0, 0), (0, 0)))
    xp = jnp.pad(x, ((0, 0), (1, 1), (1, 1), (0, 0)))

    # Wrapper-side im2col: 9 shifted views stacked on channels (~20 KB/image bf16).
    taps = [xp[:, dh:dh + H, dw:dw + W, :] for dh in range(KH) for dw in range(KW)]
    patches = jnp.concatenate(taps, axis=-1).reshape(B_pad, R, K_TAPS)
    ones = jnp.ones((B_pad, R, 1), jnp.float32)                  # bias column
    patches = jnp.concatenate([patches, ones], axis=-1)          # (B_pad, R, 37)
    patches = jnp.pad(patches, ((0, 0), (0, R_pad - R), (0, K_PAD - K_TAPS - 1)))
    patches = patches.reshape(nblk, M, K_PAD).astype(jnp.bfloat16)

    # Conv weights (Cout,Cin,kh,kw) -> (tap*Cin, Cout), bias as extra row, lane-pad.
    w_mat = jnp.transpose(w_conv, (2, 3, 1, 0)).reshape(K_TAPS, COUT)
    w_mat = jnp.concatenate([w_mat, b_conv.reshape(1, COUT)], axis=0)      # (37, 8)
    w_mat = jnp.pad(w_mat, ((0, K_PAD - K_TAPS - 1), (0, COUT_PAD - COUT)))
    w_mat = w_mat.astype(jnp.bfloat16)

    # Block-structured mean-pool matrix: 1/(H*W) on the rows owned by each image,
    # 0 on row-padding and on the sublane-padded images (rows >= bblk).
    rows = jnp.arange(bblk_pad)[:, None]
    cols = jnp.arange(M)[None, :]
    pool_mat = jnp.where((rows < bblk) & (cols // R_pad == rows) & (cols % R_pad < R),
                         1.0 / (H * W), 0.0).astype(jnp.float32)

    # Hash head weights / bias, zero-padded lane-dense.
    wf = jnp.pad(w_fc, ((0, COUT_PAD - COUT),
                        (0, CODE_PAD - CODE_LEN))).astype(jnp.float32)
    bf = jnp.pad(b_fc.reshape(1, CODE_LEN),
                 ((0, 0), (0, CODE_PAD - CODE_LEN))).astype(jnp.float32)

    out_padded = pl.pallas_call(
        fused_cnn_hash_kernel,
        out_shape=jax.ShapeDtypeStruct((nblk, bblk_pad, CODE_PAD), jnp.float32),
        grid_spec=pltpu.PrefetchScalarGridSpec(
            num_scalar_prefetch=0,
            grid=(nblk,),
            in_specs=[
                pl.BlockSpec((1, M, K_PAD), lambda g: (g, 0, 0)),
                pl.BlockSpec((K_PAD, COUT_PAD), lambda g: (0, 0)),
                pl.BlockSpec((bblk_pad, M), lambda g: (0, 0)),
                pl.BlockSpec((COUT_PAD, CODE_PAD), lambda g: (0, 0)),
                pl.BlockSpec((1, CODE_PAD), lambda g: (0, 0)),
            ],
            out_specs=pl.BlockSpec((1, bblk_pad, CODE_PAD), lambda g: (g, 0, 0)),
        ),
        compiler_params=pltpu.CompilerParams(
            dimension_semantics=("parallel",)),
    )(patches, w_mat, pool_mat, wf, bf)

    # Drop sublane/lane/batch padding: real output is (B, CODE_LEN).
    return out_padded[:, :bblk, :CODE_LEN].reshape(B_pad, CODE_LEN)[:B]


# ---------------------------------------------------------------------------
# Pure-JAX reference (for correctness check) and param init.
# ---------------------------------------------------------------------------
def reference_forward(x_nchw, params):
    w_conv, b_conv, w_fc, b_fc = params
    x = jnp.transpose(x_nchw, (0, 2, 3, 1))
    w_hwio = jnp.transpose(w_conv, (2, 3, 1, 0))
    y = jax.lax.conv_general_dilated(
        x, w_hwio, window_strides=(1, 1), padding="SAME",
        dimension_numbers=("NHWC", "HWIO", "NHWC"))
    y = jnp.maximum(y + b_conv, 0.0)
    pooled = jnp.mean(y, axis=(1, 2))
    return jnp.tanh(pooled @ w_fc + b_fc)


def init_params(key, cin=CIN, cout=COUT, code_length=CODE_LEN):
    k1, k2, k3, k4 = jax.random.split(key, 4)
    w_conv = jax.random.normal(k1, (cout, cin, 3, 3), jnp.float32) * 0.1
    b_conv = jax.random.normal(k2, (cout,), jnp.float32) * 0.1
    w_fc = jax.random.normal(k3, (cout, code_length), jnp.float32) * 0.1
    b_fc = jax.random.normal(k4, (code_length,), jnp.float32) * 0.1
    return w_conv, b_conv, w_fc, b_fc


if __name__ == "__main__":
    key = jax.random.PRNGKey(0)
    k_x, k_p = jax.random.split(key)

    B, H, W = 2, 16, 16
    x = jax.random.normal(k_x, (B, CIN, H, W), jnp.float32)
    params = init_params(k_p)

    fwd = jax.jit(model_wrapper0_forward)
    out = jax.block_until_ready(fwd(x, params))

    assert out.shape == (B, CODE_LEN)
    assert bool(jnp.all(jnp.isfinite(out)))
    assert bool(jnp.all(jnp.abs(out) <= 1.0))      # tanh range

    ref = reference_forward(x, params)
    # bf16 conv operands (f32 accumulation) -> ~1e-2-level deviation vs f32 ref;
    # intentional and absorbed by the tolerance (fine for a tanh hash head).
    assert bool(jnp.allclose(out, ref, atol=5e-2, rtol=5e-2))

    print("KERNEL_OK")
</pallas_src>

<mosaic_0001>
module attributes {stable_mosaic.version = 11 : i64} {
  func.func @fused_cnn_hash_kernel(%arg0: i32, %arg1: memref<1x256x40xbf16, #tpu.memory_space<vmem>>, %arg2: memref<40x128xbf16, #tpu.memory_space<vmem>>, %arg3: memref<8x256xf32, #tpu.memory_space<vmem>>, %arg4: memref<128x128xf32, #tpu.memory_space<vmem>>, %arg5: memref<1x128xf32, #tpu.memory_space<vmem>>, %arg6: memref<1x8x128xf32, #tpu.memory_space<vmem>>) attributes {dimension_semantics = [#tpu.dimension_semantics<parallel>], iteration_bounds = array<i64: 2>, scalar_prefetch = 0 : i64, scratch_operands = 0 : i64, tpu.core_type = #tpu.core_type<tc>, window_params = [{transform_indices = @transform_0, window_bounds = array<i64: 1, 256, 40>}, {pipeline_mode = #tpu.pipeline_mode<synchronous>, transform_indices = @transform_1, window_bounds = array<i64: 40, 128>}, {pipeline_mode = #tpu.pipeline_mode<synchronous>, transform_indices = @transform_2, window_bounds = array<i64: 8, 256>}, {pipeline_mode = #tpu.pipeline_mode<synchronous>, transform_indices = @transform_3, window_bounds = array<i64: 128, 128>}, {pipeline_mode = #tpu.pipeline_mode<synchronous>, transform_indices = @transform_4, window_bounds = array<i64: 1, 128>}, {transform_indices = @transform_5, window_bounds = array<i64: 1, 8, 128>}]} {
    %c0 = arith.constant 0 : index
    %c0_0 = arith.constant 0 : index
    %c0_1 = arith.constant 0 : index
    %0 = vector.load %arg1[%c0, %c0_0, %c0_1] : memref<1x256x40xbf16, #tpu.memory_space<vmem>>, vector<1x256x40xbf16>
    %1 = vector.shape_cast %0 : vector<1x256x40xbf16> to vector<256x40xbf16>
    %c0_2 = arith.constant 0 : index
    %c0_3 = arith.constant 0 : index
    %2 = vector.load %arg2[%c0_2, %c0_3] : memref<40x128xbf16, #tpu.memory_space<vmem>>, vector<40x128xbf16>
    %cst = arith.constant dense<0.000000e+00> : vector<256x128xf32>
    %3 = tpu.matmul %1, %2, %cst {dimension_numbers = #tpu.dot_dimension_numbers<[1], [0], [0], [1], [0, 0, 1, 1], [], []>} : vector<256x40xbf16>, vector<40x128xbf16>, vector<256x128xf32> -> vector<256x128xf32>
    %cst_4 = arith.constant 0.000000e+00 : f32
    %4 = vector.broadcast %cst_4 : f32 to vector<256x128xf32>
    %5 = arith.maximumf %3, %4 : vector<256x128xf32>
    %c0_5 = arith.constant 0 : index
    %c0_6 = arith.constant 0 : index
    %6 = vector.load %arg3[%c0_5, %c0_6] : memref<8x256xf32, #tpu.memory_space<vmem>>, vector<8x256xf32>
    %cst_7 = arith.constant dense<0.000000e+00> : vector<8x128xf32>
    %7 = tpu.matmul %6, %5, %cst_7 {dimension_numbers = #tpu.dot_dimension_numbers<[1], [0], [0], [1], [0, 0, 1, 1], [], []>} : vector<8x256xf32>, vector<256x128xf32>, vector<8x128xf32> -> vector<8x128xf32>
    %c0_8 = arith.constant 0 : index
    %c0_9 = arith.constant 0 : index
    %8 = vector.load %arg4[%c0_8, %c0_9] : memref<128x128xf32, #tpu.memory_space<vmem>>, vector<128x128xf32>
    %cst_10 = arith.constant dense<0.000000e+00> : vector<8x128xf32>
    %9 = tpu.matmul %7, %8, %cst_10 {dimension_numbers = #tpu.dot_dimension_numbers<[1], [0], [0], [1], [0, 0, 1, 1], [], []>} : vector<8x128xf32>, vector<128x128xf32>, vector<8x128xf32> -> vector<8x128xf32>
    %c0_11 = arith.constant 0 : index
    %c0_12 = arith.constant 0 : index
    %10 = vector.load %arg5[%c0_11, %c0_12] : memref<1x128xf32, #tpu.memory_space<vmem>>, vector<1x128xf32>
    %11 = vector.broadcast %10 : vector<1x128xf32> to vector<8x128xf32>
    %12 = arith.addf %9, %11 : vector<8x128xf32>
    %13 = math.tanh %12 : vector<8x128xf32>
    %c0_13 = arith.constant 0 : index
    %c0_14 = arith.constant 0 : index
    %c0_15 = arith.constant 0 : index
    %14 = vector.load %arg6[%c0_13, %c0_14, %c0_15] : memref<1x8x128xf32, #tpu.memory_space<vmem>>, vector<1x8x128xf32>
    %15 = vector.shape_cast %14 : vector<1x8x128xf32> to vector<8x128xf32>
    %16 = vector.shape_cast %13 : vector<8x128xf32> to vector<1x8x128xf32>
    tpu.vector_store %arg6[%c0_13, %c0_14, %c0_15], %16 {strides = array<i32>} : memref<1x8x128xf32, #tpu.memory_space<vmem>>, vector<1x8x128xf32>,
    return
  }
  func.func @transform_0(%arg0: i32) -> (i32, i32, i32) {
    %c0_i32 = arith.constant 0 : i32
    %c0_i32_0 = arith.constant 0 : i32
    %c0_i32_1 = arith.constant 0 : i32
    return %arg0, %c0_i32, %c0_i32_0 : i32, i32, i32
  }
  func.func @transform_1(%arg0: i32) -> (i32, i32) {
    %c0_i32 = arith.constant 0 : i32
    %c0_i32_0 = arith.constant 0 : i32
    %c0_i32_1 = arith.constant 0 : i32
    return %c0_i32, %c0_i32_0 : i32, i32
  }
  func.func @transform_2(%arg0: i32) -> (i32, i32) {
    %c0_i32 = arith.constant 0 : i32
    %c0_i32_0 = arith.constant 0 : i32
    %c0_i32_1 = arith.constant 0 : i32
    return %c0_i32, %c0_i32_0 : i32, i32
  }
  func.func @transform_3(%arg0: i32) -> (i32, i32) {
    %c0_i32 = arith.constant 0 : i32
    %c0_i32_0 = arith.constant 0 : i32
    %c0_i32_1 = arith.constant 0 : i32
    return %c0_i32, %c0_i32_0 : i32, i32
  }
  func.func @transform_4(%arg0: i32) -> (i32, i32) {
    %c0_i32 = arith.constant 0 : i32
    %c0_i32_0 = arith.constant 0 : i32
    %c0_i32_1 = arith.constant 0 : i32
    return %c0_i32, %c0_i32_0 : i32, i32
  }
  func.func @transform_5(%arg0: i32) -> (i32, i32, i32) {
    %c0_i32 = arith.constant 0 : i32
    %c0_i32_0 = arith.constant 0 : i32
    %c0_i32_1 = arith.constant 0 : i32
    return %arg0, %c0_i32, %c0_i32_0 : i32, i32, i32
  }
}

</mosaic_0001>

<bundles_post_ra>
// kernel: model_wrapper0_forward.1
= control target key start
LH: loop header
LB: loop body
LE: loop exit
PB: predicated region body
PF: predicated region fallthrough
CT: control target
= control target key end

     0   :  { %s1143_s18 = smov 0   ;;  %s1264_s0 = inlined_call_operand.vmem [shape: bf16[2,256,40], index: 0, kind: input, shape index: {}]   ;;  %s1265_s1 = inlined_call_operand.vmem [shape: bf16[40,128], index: 1, kind: input, shape index: {}]   ;;  %s1266_s2 = inlined_call_operand.vmem [shape: f32[8,256], index: 2, kind: input, shape index: {}]   ;;  %s1267_s3 = inlined_call_operand.vmem [shape: f32[128,128], index: 3, kind: input, shape index: {}]   ;;  %s1268_s4 = inlined_call_operand.vmem [shape: f32[1,128], index: 4, kind: input, shape index: {}]   ;;  %s1269_s5 = inlined_call_operand.vmem [shape: f32[2,8,128], index: 5, kind: output, shape index: {}]  }
   0x1 LB: > { %s822_s19 = sadd.s32 4294967295, %s1108_s18   ;;  %p826_p0 = scmp.ge.s32.totalorder %s1108_s18, 1  ;;  %s1108_s18 = sphi %s1143_s18, %s15_s18  }
   0x2   : > { %p187_p1 = scmp.lt.s32.totalorder %s1108_s18, 3 }
   0x4   : > { %p188_p2 = pnand %p826_p0, %p187_p1 }
   0x5   : > { %v1081_v0 = vld [vmem:[%s1265_s1] sm:$0xff] (!%p188_p2)   ;;  %v1082_v1 = vld [vmem:[%s1265_s1 + $0x8] sm:$0xff] (!%p188_p2)   ;;  %p214_p3 = scmp.lt.s32.totalorder (!%p188_p2), %s822_s19, 1  ;;  %v1083_v2 = vld [vmem:[%s1265_s1 + $0x10] ss:$0 sps:$4 sm:$0xff] (!%p188_p2)   ;;  %vm405_vm0 = vcmask (!%p188_p2), 1043456  }
   0x6   : > { %191 = sbr.rel (%p188_p2) target bundleno = 742 (0x2e6), region = 40  ;;  %940 = vmatprep.subr.bf16.mxu0 (!%p188_p2), %v1081_v0  ;;  %vm356_vm1 = vcmask (!%p188_p2), 326656   ;;  %v407_v4 = vsel (!%p188_p2), %vm405_vm0, %v1083_v2, 0  ;;  %v603_v20 = vld [vmem:[%s1266_s2 + $0x8] sm:$0xff] (!%p188_p2)  ;;  %vm1111_vm2 = vmmov (!%p188_p2), 0  }
   0x7   : > { %941 = vmatpush3.bf16.msra.mxu0 (!%p188_p2), %v1081_v0  ;;  %668 = vmatprep.mubr.f32.mxu1 (!%p188_p2), %v603_v20 }
   0x8   : > { %942 = vmatprep.subr.bf16.mxu0 (!%p188_p2), %v1082_v1 }
   0xb   : > { %943 = vmatpush3.bf16.msra.mxu0 (!%p188_p2), %v1082_v1 }
   0xc   : > { %1069 = vmatprep.subr.msk.bf16.mxu0 (!%p188_p2), %vm405_vm0, %v1083_v2 }
   0xd   : > { %s1271_s19 = smov (!%p214_p3, %s822_s19), 1 }
   0xe   : > { %s868_s26 = sshll.u32 %s1271_s19, 7  ;;  %s829_s22 = sshll.u32 %s1271_s19, 3 }
   0xf   : > { %s1166_s29 = scalar_lea.vmem %s1264_s0, %s868_s26  ;;  %945 = vmatpush3.bf16.msra.mxu0 %v407_v4  ;;  %s222_s25 = scalar_lea.vmem %s1269_s5, %s829_s22 }
  0x10   : > { %v1084_v3 = vld [vmem:[%s1166_s29] sm:$0xff]   ;;  %v1085_v5 = vld [vmem:[%s1166_s29 + $0x8] sm:$0xff]   ;;  %v1086_v6 = vld [vmem:[%s1166_s29 + $0x10] sm:$0xff]  }
  0x11   : > { %946 = vmatprep.mubr.msk.bf16.mxu0 %vm356_vm1, %v1084_v3  ;;  %v1087_v7 = vld [vmem:[%s1166_s29 + $0x18] sm:$0xff]   ;;  %v1088_v8 = vld [vmem:[%s1166_s29 + $0x20] sm:$0xff]   ;;  %v1089_v9 = vld [vmem:[%s1166_s29 + $0x28] sm:$0xff]  }
  0x12   : > { %947 = vmatmul.mubr.msk.bf16.vlgmr.msra.gmra.mrb[0].mxu0 %vm356_vm1, %v1085_v5  ;;  %v1090_v10 = vld [vmem:[%s1166_s29 + $0x30] sm:$0xff]   ;;  %v1091_v11 = vld [vmem:[%s1166_s29 + $0x38] sm:$0xff]   ;;  %v1092_v12 = vld [vmem:[%s1166_s29 + $0x40] sm:$0xff]  }
  0x13   : > { %950 = vmatprep.mubr.msk.bf16.mxu0 %vm356_vm1, %v1086_v6  ;;  %v1093_v13 = vld [vmem:[%s1166_s29 + $0x48] sm:$0xff]   ;;  %v1094_v14 = vld [vmem:[%s1166_s29 + $0x50] sm:$0xff]   ;;  %v1095_v15 = vld [vmem:[%s1166_s29 + $0x58] sm:$0xff]  }
  0x14   : > { %v1096_v16 = vld [vmem:[%s1166_s29 + $0x60] sm:$0xff]   ;;  %v1097_v17 = vld [vmem:[%s1166_s29 + $0x68] sm:$0xff]   ;;  %v1098_v18 = vld [vmem:[%s1166_s29 + $0x70] sm:$0xff]  }
  0x15   : > { %v1099_v19 = vld [vmem:[%s1166_s29 + $0x78] sm:$0xff]  }
  0x1a   : > { %951 = vmatmul.mubr.msk.bf16.gmra.mrb[4].mxu0 %vm356_vm1, %v1087_v7 }
  0x1b   : > { %954 = vmatprep.mubr.msk.bf16.mxu0 %vm356_vm1, %v1088_v8 }
  0x22   : > { %955 = vmatmul.mubr.msk.bf16.gmra.mrb[8].mxu0 %vm356_vm1, %v1089_v9 }
  0x23   : > { %958 = vmatprep.mubr.msk.bf16.mxu0 %vm356_vm1, %v1090_v10 }
  0x2a   : > { %959 = vmatmul.mubr.msk.bf16.gmra.mrb[12].mxu0 %vm356_vm1, %v1091_v11 }
  0x2b   : > { %962 = vmatprep.mubr.msk.bf16.mxu0 %vm356_vm1, %v1092_v12 }
  0x32   : > { %963 = vmatmul.mubr.msk.bf16.gmra.mrb[16].mxu0 %vm356_vm1, %v1093_v13 }
  0x33   : > { %966 = vmatprep.mubr.msk.bf16.mxu0 %vm356_vm1, %v1094_v14 }
  0x3a   : > { %967 = vmatmul.mubr.msk.bf16.gmra.mrb[20].mxu0 %vm356_vm1, %v1095_v15 }
  0x3b   : > { %970 = vmatprep.mubr.msk.bf16.mxu0 %vm356_vm1, %v1096_v16 }
  0x42   : > { %971 = vmatmul.mubr.msk.bf16.gmra.mrb[24].mxu0 %vm356_vm1, %v1097_v17 }
  0x43   : > { %974 = vmatprep.mubr.msk.bf16.mxu0 %vm356_vm1, %v1098_v18 }
  0x4a   : > { %975 = vmatmul.mubr.msk.bf16.gmra.mrb[28].mxu0 %vm356_vm1, %v1099_v19 }
  0xe5   : > { %v948_v21 = vpop.f32.mrb[0].mxu0 }
  0xe6   : > { %v443_v22 = vpop.f32.mrb[1].mxu0  ;;  %v572_v24 = vmax.f32 %v948_v21, 0.0 }
  0xe7   : > { %v949_v23 = vpop.f32.mrb[2].mxu0  ;;  %v570_v27 = vmax.f32 %v443_v22, 0.0 }
  0xe8   : > { %v573_v25 = vmax.f32 %v949_v23, 0.0  ;;  %v446_v26 = vpop.f32.mrb[3].mxu0 }
  0xe9   : > { %v571_v28 = vmax.f32 %v446_v26, 0.0 }
  0xea   : > { %v1019_v29 = vpack.c.bf16 %v573_v25, %v572_v24 }
  0xeb   : > { %v1015_v30 = vpack.c.bf16 %v571_v28, %v570_v27 }
  0xed   : > { %v952_v31 = vpop.f32.mrb[4].mxu0 }
  0xee   : > { %v459_v32 = vpop.f32.mrb[5].mxu0  ;;  %v576_v34 = vmax.f32 %v952_v31, 0.0 }
  0xef   : > { %v953_v33 = vpop.f32.mrb[6].mxu0  ;;  %v574_v37 = vmax.f32 %v459_v32, 0.0 }
  0xf0   : > { %v577_v35 = vmax.f32 %v953_v33, 0.0  ;;  %v462_v36 = vpop.f32.mrb[7].mxu0 }
  0xf1   : > { %v575_v38 = vmax.f32 %v462_v36, 0.0 }
  0xf2   : > { %v1027_v39 = vpack.c.bf16 %v577_v35, %v576_v34 }
  0xf3   : > { %v1023_v40 = vpack.c.bf16 %v575_v38, %v574_v37  ;;  %v674_v37 = vld [vmem:[%s1267_s3] sm:$0xff]  ;;  %v675_v38 = vld [vmem:[%s1267_s3 + $0x8] sm:$0xff] }
  0xf5   : > { %v956_v41 = vpop.f32.mrb[8].mxu0 }
  0xf6   : > { %v475_v42 = vpop.f32.mrb[9].mxu0  ;;  %v580_v44 = vmax.f32 %v956_v41, 0.0  ;;  %v1110_v41 = vmov 0.0|0.0  }
  0xf7   : > { %v957_v43 = vpop.f32.mrb[10].mxu0  ;;  %v578_v47 = vmax.f32 %v475_v42, 0.0  ;;  %v676_v42 = vld [vmem:[%s1267_s3 + $0x10] sm:$0xff] }
  0xf8   : > { %v581_v45 = vmax.f32 %v957_v43, 0.0  ;;  %v478_v46 = vpop.f32.mrb[11].mxu0  ;;  %v677_v43 = vld [vmem:[%s1267_s3 + $0x18] sm:$0xff] }
  0xf9   : > { %v579_v48 = vmax.f32 %v478_v46, 0.0  ;;  %v679_v46 = vld [vmem:[%s1267_s3 + $0x28] sm:$0xff] }
  0xfa   : > { %v1035_v49 = vpack.c.bf16 %v581_v45, %v580_v44  ;;  %v1049_v44 = vpack.c.bf16 %v677_v43, %v676_v42  ;;  %v678_v45 = vld [vmem:[%s1267_s3 + $0x20] sm:$0xff] }
  0xfb   : > { %v1031_v50 = vpack.c.bf16 %v579_v48, %v578_v47  ;;  %v1052_v47 = vpack.c.bf16 %v679_v46, %v678_v45  ;;  %v680_v48 = vld [vmem:[%s1267_s3 + $0x30] sm:$0xff] }
  0xfd   : > { %v960_v51 = vpop.f32.mrb[12].mxu0 }
  0xfe   : > { %v491_v52 = vpop.f32.mrb[13].mxu0  ;;  %v584_v54 = vmax.f32 %v960_v51, 0.0  ;;  %v682_v51 = vld [vmem:[%s1267_s3 + $0x40] sm:$0xff] }
  0xff   : > { %v961_v53 = vpop.f32.mrb[14].mxu0  ;;  %v582_v57 = vmax.f32 %v491_v52, 0.0  ;;  %v683_v52 = vld [vmem:[%s1267_s3 + $0x48] sm:$0xff] }
 0x100   : > { %v585_v55 = vmax.f32 %v961_v53, 0.0  ;;  %v494_v56 = vpop.f32.mrb[15].mxu0  ;;  %v1058_v53 = vpack.c.bf16 %v683_v52, %v682_v51 }
 0x101   : > { %v583_v58 = vmax.f32 %v494_v56, 0.0 }
 0x102   : > { %v1043_v59 = vpack.c.bf16 %v585_v55, %v584_v54  ;;  %v684_v54 = vld [vmem:[%s1267_s3 + $0x50] sm:$0xff]  ;;  %v685_v55 = vld [vmem:[%s1267_s3 + $0x58] sm:$0xff] }
 0x103   : > { %v1039_v60 = vpack.c.bf16 %v583_v58, %v582_v57  ;;  %v1061_v56 = vpack.c.bf16 %v685_v55, %v684_v54  ;;  %v686_v57 = vld [vmem:[%s1267_s3 + $0x60] sm:$0xff]  ;;  %v687_v58 = vld [vmem:[%s1267_s3 + $0x68] sm:$0xff] }
 0x105   : > { %v964_v61 = vpop.f32.mrb[16].mxu0 }
 0x106   : > { %v507_v62 = vpop.f32.mrb[17].mxu0  ;;  %v588_v0 = vmax.f32 %v964_v61, 0.0  ;;  %v689_v61 = vld [vmem:[%s1267_s3 + $0x78] sm:$0xff] }
 0x107   : > { %v965_v63 = vpop.f32.mrb[18].mxu0  ;;  %v586_v3 = vmax.f32 %v507_v62, 0.0 }
 0x108   : > { %v589_v1 = vmax.f32 %v965_v63, 0.0  ;;  %v510_v2 = vpop.f32.mrb[19].mxu0  ;;  %v1112_v63 = vmov 0.0  }
 0x109   : > { %v587_v4 = vmax.f32 %v510_v2, 0.0 }
 0x10a   : > { %v1017_v5 = vpack.c.bf16 %v589_v1, %v588_v0 }
 0x10b   : > { %v1013_v6 = vpack.c.bf16 %v587_v4, %v586_v3  ;;  %v865_v3 = vld [vmem:[%s1268_s4] ss:$0 sm:$0xff] }
 0x10d   : > { %v968_v7 = vpop.f32.mrb[20].mxu0  ;;  %1014 = vmatprep.subr.bf16.mxu1 %v1013_v6 }
 0x10e   : > { %v523_v8 = vpop.f32.mrb[21].mxu0  ;;  %1016 = vmatpush3.bf16.msra.mxu1 %v1015_v30  ;;  %v592_v10 = vmax.f32 %v968_v7, 0.0 }
 0x10f   : > { %v969_v9 = vpop.f32.mrb[22].mxu0  ;;  %1018 = vmatprep.subr.bf16.mxu1 %v1017_v5  ;;  %v590_v13 = vmax.f32 %v523_v8, 0.0 }
 0x110   : > { %v593_v11 = vmax.f32 %v969_v9, 0.0  ;;  %v526_v12 = vpop.f32.mrb[23].mxu0 }
 0x111   : > { %v591_v14 = vmax.f32 %v526_v12, 0.0 }
 0x112   : > { %v1025_v15 = vpack.c.bf16 %v593_v11, %v592_v10  ;;  %1020 = vmatpush3.bf16.msra.mxu1 %v1019_v29 }
 0x113   : > { %v1021_v16 = vpack.c.bf16 %v591_v14, %v590_v13 }
 0x115   : > { %v972_v17 = vpop.f32.mrb[24].mxu0  ;;  %1022 = vmatprep.subr.bf16.mxu1 %v1021_v16 }
 0x116   : > { %v539_v18 = vpop.f32.mrb[25].mxu0  ;;  %1024 = vmatpush3.bf16.msra.mxu1 %v1023_v40  ;;  %v596_v20 = vmax.f32 %v972_v17, 0.0  ;;  %v1046_v40 = vpack.c.bf16 %v675_v38, %v674_v37 }
 0x117   : > { %v973_v19 = vpop.f32.mrb[26].mxu0  ;;  %1026 = vmatprep.subr.bf16.mxu1 %v1025_v15  ;;  %v594_v23 = vmax.f32 %v539_v18, 0.0 }
 0x118   : > { %v597_v21 = vmax.f32 %v973_v19, 0.0  ;;  %v542_v22 = vpop.f32.mrb[27].mxu0 }
 0x119   : > { %v595_v24 = vmax.f32 %v542_v22, 0.0 }
 0x11a   : > { %v1033_v25 = vpack.c.bf16 %v597_v21, %v596_v20  ;;  %1028 = vmatpush3.bf16.msra.mxu1 %v1027_v39  ;;  %v602_v39 = vld [vmem:[%s1266_s2] sm:$0xff] }
 0x11b   : > { %v1029_v26 = vpack.c.bf16 %v595_v24, %v594_v23 }
 0x11d   : > { %v976_v27 = vpop.f32.mrb[28].mxu0  ;;  %1030 = vmatprep.subr.bf16.mxu1 %v1029_v26 }
 0x11e   : > { %v555_v28 = vpop.f32.mrb[29].mxu0  ;;  %1032 = vmatpush3.bf16.msra.mxu1 %v1031_v50  ;;  %v600_v30 = vmax.f32 %v976_v27, 0.0 }
 0x11f   : > { %v977_v29 = vpop.f32.mrb[30].mxu0  ;;  %1034 = vmatprep.subr.bf16.mxu1 %v1033_v25  ;;  %v598_v33 = vmax.f32 %v555_v28, 0.0 }
 0x120   : > { %v601_v31 = vmax.f32 %v977_v29, 0.0  ;;  %v558_v32 = vpop.f32.mrb[31].mxu0 }
 0x121   : > { %v599_v34 = vmax.f32 %v558_v32, 0.0 }
 0x122   : > { %v1041_v35 = vpack.c.bf16 %v601_v31, %v600_v30  ;;  %1036 = vmatpush3.bf16.msra.mxu1 %v1035_v49  ;;  %v681_v49 = vld [vmem:[%s1267_s3 + $0x38] sm:$0xff] }
 0x123   : > { %v1037_v36 = vpack.c.bf16 %v599_v34, %v598_v33  ;;  %v1055_v50 = vpack.c.bf16 %v681_v49, %v680_v48 }
 0x125   : > { %1038 = vmatprep.subr.bf16.mxu1 %v1037_v36 }
 0x126   : > { %1040 = vmatpush3.bf16.msra.mxu1 %v1039_v60  ;;  %v688_v60 = vld [vmem:[%s1267_s3 + $0x70] sm:$0xff] }
 0x127   : > { %1042 = vmatprep.subr.bf16.mxu1 %v1041_v35  ;;  %v1067_v62 = vpack.c.bf16 %v689_v61, %v688_v60 }
 0x12a   : > { %1044 = vmatpush3.bf16.msra.mxu1 %v1043_v59  ;;  %v1064_v59 = vpack.c.bf16 %v687_v58, %v686_v57 }
 0x12b   : > { %1045 = vmatprep.subr.bf16.mxu1 %v1110_v41 }
 0x12d   : > { %669 = vmatmul.mubr.f32.vlgmr.msra.gmra.mrb[0].mxu1 %v602_v39 }
 0x12e   : > { %1047 = vmatpush3.bf16.msra.mxu1 %v1046_v40  ;;  %1010 = vmatprep.mubr.msk.f32.mxu1 %vm1111_vm2, %v1112_v63 }
 0x12f   : > { %1048 = vmatprep.subr.bf16.mxu1 %v1110_v41 }
 0x132   : > { %1050 = vmatpush3.bf16.msra.mxu1 %v1049_v44 }
 0x133   : > { %1051 = vmatprep.subr.bf16.mxu1 %v1110_v41 }
 0x136   : > { %1053 = vmatpush3.bf16.msra.mxu1 %v1052_v47 }
 0x137   : > { %1054 = vmatprep.subr.bf16.mxu1 %v1110_v41 }
 0x13a   : > { %1056 = vmatpush3.bf16.msra.mxu1 %v1055_v50 }
 0x13b   : > { %1057 = vmatprep.subr.bf16.mxu1 %v1110_v41 }
 0x13e   : > { %1059 = vmatpush3.bf16.msra.mxu1 %v1058_v53 }
 0x13f   : > { %1060 = vmatprep.subr.bf16.mxu1 %v1110_v41 }
 0x142   : > { %1062 = vmatpush3.bf16.msra.mxu1 %v1061_v56 }
 0x143   : > { %1063 = vmatprep.subr.bf16.mxu1 %v1110_v41 }
 0x146   : > { %1065 = vmatpush3.bf16.msra.mxu1 %v1064_v59 }
 0x147   : > { %1066 = vmatprep.subr.bf16.mxu1 %v1110_v41 }
 0x14a   : > { %1068 = vmatpush3.bf16.msra.mxu1 %v1067_v62 }
 0x200   : > { %v920_v0 = vpop.f32.mrb[0].mxu1 }
 0x201   : > { %v921_v1 = vpop.f32.mrb[1].mxu1 }
 0x202   : > { %v922_v2 = vadd.f32 %v921_v1, %v920_v0 }
 0x204   : > { %1011 = vmatmul.mubr.f32.vlgmr.msra.gmra.mrb[2].mxu1 %v922_v2 }
 0x2d7   : > { %v763_v4 = vpop.f32.mrb[2].mxu1 }
 0x2d8   : > { %v764_v5 = vadd.f32 %v865_v3, %v763_v4  ;;  %v1012_v6 = vpop.f32.mrb[3].mxu1 }
 0x2da   : > { %1100 = vtanh.f32 %v764_v5 }
 0x2e4   : > { %v1101_v7 = vpop.eup %1100 }
 0x2e5   : > { %768 = vst [vmem:[%s222_s25] sm:$0xff] %v1101_v7 }
 0x2e6 PF: > { %s15_s18 = sadd.s32 1, %s1108_s18  }
 0x2e7   : > { %p12_p4 = scmp.ge.s32.totalorder %s15_s18, 4  }
 0x2e9   :  { %14 = sbr.rel (!%p12_p4) target bundleno = 1 (0x1), region = 70 }

</bundles_post_ra>
